<compile_context>
chip_gen: v7x
topology: tpu7x:2x2x1
jax: 0.10.0
libtpu: 0.0.40
codegen_flags: <defaults>
</compile_context>

<pallas_src>
import numpy as np
import jax
import jax.numpy as jnp
from jax.experimental import pallas as pl
from jax.experimental.pallas import tpu as pltpu

# ---------------- model configuration (small, deterministic) ----------------
B        = 2     # batch
N_CATE   = 6     # categorical feature channels (CateEncoder input width)
N_NUME   = 10    # fixed by nn.Conv1d(10, c_emb, 1)
N_DEMO   = 4     # fixed by nn.Linear(4, c_emb)
C_EMB    = 16    # c_emb
SEQ_LEN  = 16    # seq_len
HIDDEN   = 32    # hidden_size
C_OUT    = 4     # c_out

# ---- fused / packed layout constants ----
SUBLANE   = 8                             # f32 sublane count; per-step batch pad target
N_FEAT    = N_CATE + N_NUME + N_DEMO      # 20 raw feature channels
K_PAD     = 32                            # padded contraction width (20 feats + 1 bias-one + 11 zeros)
ROW_WIN   = 0                             # slab rows [ 0, 32), cols [0,32) : fused input projection (+bias row)
ROW_WHH   = K_PAD                         # slab rows [32, 64), cols [0,32) : w_hh
ROW_WFC   = ROW_WHH + HIDDEN              # slab rows [64, 96), cols [0,C_OUT): w_fc (own aligned region, lane 0)
ROW_BFC   = ROW_WFC + HIDDEN              # slab rows [96,104), cols [0,C_OUT): b_fc replicated across 8 sublanes
SLAB_ROWS = ROW_BFC + SUBLANE             # 104, multiple of 8
SLAB_COLS = 128                           # one full lane width


# ------------------------------- Pallas kernel ------------------------------
def rnnplus_kernel(feats_ref, slab_ref, out_ref):
    """Single invocation: processes ALL batch elements.

    feats_ref: (SEQ_LEN*8, K_PAD)  time-major, 8-sublane-padded
               [cate|nume|demo|1|0...] features (rows 8t..8t+B-1 valid)
    slab_ref : (SLAB_ROWS, SLAB_COLS) packed parameters
    out_ref  : (8, 128) lane-dense output block (rows 0..B-1, cols 0..C_OUT-1 valid)
    """
    feats = feats_ref[...]                                               # (S*8, K_PAD)
    w_in  = slab_ref[ROW_WIN:ROW_WIN + K_PAD, 0:HIDDEN]                  # (K_PAD, H)
    w_hh  = slab_ref[ROW_WHH:ROW_WHH + HIDDEN, 0:HIDDEN]                 # (H, H)  loop-invariant
    w_fc  = slab_ref[ROW_WFC:ROW_WFC + HIDDEN, :]                        # (H, 128), cols 0:C_OUT valid
    b_fc  = slab_ref[ROW_BFC:ROW_BFC + SUBLANE, :]                       # (8, 128), replicated bias rows

    # --- fused encoders + RNN input projection + (b_ih + b_hh): ONE MXU matmul
    #     (bias enters through the constant-1 feature column; padded rows stay 0)
    pre = jnp.dot(feats, w_in, preferred_element_type=jnp.float32)       # (S*8, H), time-major

    # --- fully-unrolled, batched tanh recurrence (h0 = 0, PyTorch nn.RNN default)
    #     h carried as (8, H); rows B..7 remain exactly 0 throughout.
    h = jnp.zeros((SUBLANE, HIDDEN), jnp.float32)
    for t in range(SEQ_LEN):                                             # static unroll
        pre_t = pre[t * SUBLANE:(t + 1) * SUBLANE, :]                    # sublane-aligned (8, H) slice
        h = jnp.tanh(pre_t + jnp.dot(h, w_hh, preferred_element_type=jnp.float32))

    # --- head: last_step -> Linear(H, c_out); lane-dense unmasked (8,128) store
    out_ref[...] = jnp.dot(h, w_fc, preferred_element_type=jnp.float32) + b_fc


# ---------------------------- host-side param packing ------------------------
def pack_params(p):
    """Exact algebraic pre-composition of all pre-RNN linear maps + lane-dense packing."""
    w_in = jnp.concatenate([p["w_cate"], p["w_nume"], p["w_demo"]], axis=0) @ p["w_ih"]  # (20, H)
    b_pre = (p["b_ih"] + p["b_hh"]).reshape(1, HIDDEN)                                   # (1, H)
    w_in_aug = jnp.concatenate(
        [w_in, b_pre, jnp.zeros((K_PAD - N_FEAT - 1, HIDDEN), jnp.float32)], axis=0)     # (K_PAD, H)

    slab = jnp.zeros((SLAB_ROWS, SLAB_COLS), jnp.float32)
    slab = slab.at[ROW_WIN:ROW_WIN + K_PAD, 0:HIDDEN].set(w_in_aug)
    slab = slab.at[ROW_WHH:ROW_WHH + HIDDEN, 0:HIDDEN].set(p["w_hh"])
    slab = slab.at[ROW_WFC:ROW_WFC + HIDDEN, 0:C_OUT].set(p["w_fc"])
    slab = slab.at[ROW_BFC:ROW_BFC + SUBLANE, 0:C_OUT].set(
        jnp.broadcast_to(p["b_fc"].reshape(1, C_OUT), (SUBLANE, C_OUT)))
    return slab


# ------------------------------- host wrapper --------------------------------
@jax.jit
def rnnplus_forward(cate, nume, demo, slab):
    """cate:(B,N_CATE,S) nume:(B,N_NUME,S) demo:(B,N_DEMO) -- PyTorch NCW layout."""
    # Time-major, channel-last, 8-sublane-padded feature block: (S, 8, K_PAD)
    cate_t = jnp.transpose(cate, (2, 0, 1)).astype(jnp.float32)          # (S, B, N_CATE)
    nume_t = jnp.transpose(nume, (2, 0, 1)).astype(jnp.float32)          # (S, B, N_NUME)
    demo_b = jnp.broadcast_to(demo.astype(jnp.float32)[None], (SEQ_LEN, B, N_DEMO))
    ones   = jnp.ones((SEQ_LEN, B, 1), jnp.float32)                      # bias-carrier column (valid rows only)
    feats  = jnp.concatenate([cate_t, nume_t, demo_b, ones], axis=-1)    # (S, B, N_FEAT+1)
    feats  = jnp.pad(feats, ((0, 0), (0, SUBLANE - B), (0, K_PAD - (N_FEAT + 1))))
    feats  = feats.reshape(SEQ_LEN * SUBLANE, K_PAD)

    out = pl.pallas_call(
        rnnplus_kernel,
        out_shape=jax.ShapeDtypeStruct((SUBLANE, SLAB_COLS), jnp.float32),
        in_specs=[
            pl.BlockSpec(memory_space=pltpu.MemorySpace.VMEM),
            pl.BlockSpec(memory_space=pltpu.MemorySpace.VMEM),
        ],
        out_specs=pl.BlockSpec(memory_space=pltpu.MemorySpace.VMEM),
    )(feats, slab)
    return out[:B, :C_OUT]


# ------------------------------ pure-JAX reference ---------------------------
def rnnplus_reference(cate, nume, demo, p):
    x_cate = jnp.einsum('bcs,ce->bse', cate, p["w_cate"])
    x_nume = jnp.einsum('bcs,ce->bse', nume, p["w_nume"])
    x_demo = (demo @ p["w_demo"])[:, None, :]
    x = x_cate + x_nume + x_demo                          # (B, S, C_EMB)
    pre = x @ p["w_ih"] + p["b_ih"]                       # (B, S, H)
    h = jnp.zeros((B, HIDDEN), jnp.float32)
    for t in range(SEQ_LEN):
        h = jnp.tanh(pre[:, t] + h @ p["w_hh"] + p["b_hh"])
    return h @ p["w_fc"] + p["b_fc"]


# ---------------------------- deterministic params ---------------------------
def init_params(key):
    ks = jax.random.split(key, 10)
    u = lambda k, shape, s: jax.random.uniform(k, shape, jnp.float32, -s, s)
    kh = 1.0 / np.sqrt(HIDDEN)
    return {
        # kaiming-normal-ish 1x1 conv weights (stored transposed: in x out)
        "w_cate": jax.random.normal(ks[0], (N_CATE, C_EMB), jnp.float32)
                  * np.sqrt(2.0 / C_EMB),
        "w_nume": jax.random.normal(ks[1], (N_NUME, C_EMB), jnp.float32)
                  * np.sqrt(2.0 / C_EMB),
        "w_demo": u(ks[2], (N_DEMO, C_EMB), 1.0 / np.sqrt(N_DEMO)),
        # nn.RNN params (stored transposed so kernel does x @ W)
        "w_ih": u(ks[3], (C_EMB, HIDDEN), kh),
        "w_hh": u(ks[4], (HIDDEN, HIDDEN), kh),
        "b_ih": u(ks[5], (1, HIDDEN), kh),
        "b_hh": u(ks[6], (1, HIDDEN), kh),
        # head Linear(H, c_out)
        "w_fc": u(ks[7], (HIDDEN, C_OUT), kh),
        "b_fc": u(ks[8], (1, C_OUT), kh),
    }


if __name__ == "__main__":
    key = jax.random.PRNGKey(0)
    kc, kn, kd, kp = jax.random.split(key, 4)

    # PyTorch-layout example inputs
    cate = jax.random.normal(kc, (B, N_CATE, SEQ_LEN), jnp.float32)
    nume = jax.random.normal(kn, (B, N_NUME, SEQ_LEN), jnp.float32)
    demo = jax.random.normal(kd, (B, N_DEMO), jnp.float32)

    params = init_params(kp)
    slab = pack_params(params)     # one-time host-side fusion + packing

    out = jax.block_until_ready(rnnplus_forward(cate, nume, demo, slab))
    ref = jax.block_until_ready(rnnplus_reference(cate, nume, demo, params))

    assert out.shape == (B, C_OUT)
    np.testing.assert_allclose(np.asarray(out), np.asarray(ref), rtol=1e-4, atol=1e-5)
    print("KERNEL_OK")
</pallas_src>

<mosaic_0001>
module attributes {stable_mosaic.version = 11 : i64} {
  func.func @rnnplus_kernel(%arg0: memref<128x32xf32, #tpu.memory_space<vmem>>, %arg1: memref<104x128xf32, #tpu.memory_space<vmem>>, %arg2: memref<8x128xf32, #tpu.memory_space<vmem>>) attributes {dimension_semantics = [], scalar_prefetch = 0 : i64, scratch_operands = 0 : i64, tpu.core_type = #tpu.core_type<tc>} {
    %c0 = arith.constant 0 : index
    %c0_0 = arith.constant 0 : index
    %0 = vector.load %arg0[%c0, %c0_0] : memref<128x32xf32, #tpu.memory_space<vmem>>, vector<128x32xf32>
    %c0_1 = arith.constant 0 : index
    %c0_2 = arith.constant 0 : index
    %1 = vector.load %arg1[%c0_1, %c0_2] : memref<104x128xf32, #tpu.memory_space<vmem>>, vector<32x32xf32>
    %c32 = arith.constant 32 : index
    %c0_3 = arith.constant 0 : index
    %2 = vector.load %arg1[%c32, %c0_3] : memref<104x128xf32, #tpu.memory_space<vmem>>, vector<32x32xf32>
    %c64 = arith.constant 64 : index
    %c0_4 = arith.constant 0 : index
    %3 = vector.load %arg1[%c64, %c0_4] : memref<104x128xf32, #tpu.memory_space<vmem>>, vector<32x128xf32>
    %c96 = arith.constant 96 : index
    %c0_5 = arith.constant 0 : index
    %4 = vector.load %arg1[%c96, %c0_5] : memref<104x128xf32, #tpu.memory_space<vmem>>, vector<8x128xf32>
    %cst = arith.constant dense<0.000000e+00> : vector<128x32xf32>
    %5 = tpu.matmul %0, %1, %cst {dimension_numbers = #tpu.dot_dimension_numbers<[1], [0], [0], [1], [0, 0, 1, 1], [], []>} : vector<128x32xf32>, vector<32x32xf32>, vector<128x32xf32> -> vector<128x32xf32>
    %cst_6 = arith.constant 0.000000e+00 : f32
    %6 = vector.broadcast %cst_6 : f32 to vector<8x32xf32>
    %7 = vector.extract_strided_slice %5 {offsets = [0, 0], sizes = [8, 32], strides = [1, 1]} : vector<128x32xf32> to vector<8x32xf32>
    %cst_7 = arith.constant dense<0.000000e+00> : vector<8x32xf32>
    %8 = tpu.matmul %6, %2, %cst_7 {dimension_numbers = #tpu.dot_dimension_numbers<[1], [0], [0], [1], [0, 0, 1, 1], [], []>} : vector<8x32xf32>, vector<32x32xf32>, vector<8x32xf32> -> vector<8x32xf32>
    %9 = arith.addf %7, %8 : vector<8x32xf32>
    %10 = math.tanh %9 : vector<8x32xf32>
    %11 = vector.extract_strided_slice %5 {offsets = [8, 0], sizes = [8, 32], strides = [1, 1]} : vector<128x32xf32> to vector<8x32xf32>
    %cst_8 = arith.constant dense<0.000000e+00> : vector<8x32xf32>
    %12 = tpu.matmul %10, %2, %cst_8 {dimension_numbers = #tpu.dot_dimension_numbers<[1], [0], [0], [1], [0, 0, 1, 1], [], []>} : vector<8x32xf32>, vector<32x32xf32>, vector<8x32xf32> -> vector<8x32xf32>
    %13 = arith.addf %11, %12 : vector<8x32xf32>
    %14 = math.tanh %13 : vector<8x32xf32>
    %15 = vector.extract_strided_slice %5 {offsets = [16, 0], sizes = [8, 32], strides = [1, 1]} : vector<128x32xf32> to vector<8x32xf32>
    %cst_9 = arith.constant dense<0.000000e+00> : vector<8x32xf32>
    %16 = tpu.matmul %14, %2, %cst_9 {dimension_numbers = #tpu.dot_dimension_numbers<[1], [0], [0], [1], [0, 0, 1, 1], [], []>} : vector<8x32xf32>, vector<32x32xf32>, vector<8x32xf32> -> vector<8x32xf32>
    %17 = arith.addf %15, %16 : vector<8x32xf32>
    %18 = math.tanh %17 : vector<8x32xf32>
    %19 = vector.extract_strided_slice %5 {offsets = [24, 0], sizes = [8, 32], strides = [1, 1]} : vector<128x32xf32> to vector<8x32xf32>
    %cst_10 = arith.constant dense<0.000000e+00> : vector<8x32xf32>
    %20 = tpu.matmul %18, %2, %cst_10 {dimension_numbers = #tpu.dot_dimension_numbers<[1], [0], [0], [1], [0, 0, 1, 1], [], []>} : vector<8x32xf32>, vector<32x32xf32>, vector<8x32xf32> -> vector<8x32xf32>
    %21 = arith.addf %19, %20 : vector<8x32xf32>
    %22 = math.tanh %21 : vector<8x32xf32>
    %23 = vector.extract_strided_slice %5 {offsets = [32, 0], sizes = [8, 32], strides = [1, 1]} : vector<128x32xf32> to vector<8x32xf32>
    %cst_11 = arith.constant dense<0.000000e+00> : vector<8x32xf32>
    %24 = tpu.matmul %22, %2, %cst_11 {dimension_numbers = #tpu.dot_dimension_numbers<[1], [0], [0], [1], [0, 0, 1, 1], [], []>} : vector<8x32xf32>, vector<32x32xf32>, vector<8x32xf32> -> vector<8x32xf32>
    %25 = arith.addf %23, %24 : vector<8x32xf32>
    %26 = math.tanh %25 : vector<8x32xf32>
    %27 = vector.extract_strided_slice %5 {offsets = [40, 0], sizes = [8, 32], strides = [1, 1]} : vector<128x32xf32> to vector<8x32xf32>
    %cst_12 = arith.constant dense<0.000000e+00> : vector<8x32xf32>
    %28 = tpu.matmul %26, %2, %cst_12 {dimension_numbers = #tpu.dot_dimension_numbers<[1], [0], [0], [1], [0, 0, 1, 1], [], []>} : vector<8x32xf32>, vector<32x32xf32>, vector<8x32xf32> -> vector<8x32xf32>
    %29 = arith.addf %27, %28 : vector<8x32xf32>
    %30 = math.tanh %29 : vector<8x32xf32>
    %31 = vector.extract_strided_slice %5 {offsets = [48, 0], sizes = [8, 32], strides = [1, 1]} : vector<128x32xf32> to vector<8x32xf32>
    %cst_13 = arith.constant dense<0.000000e+00> : vector<8x32xf32>
    %32 = tpu.matmul %30, %2, %cst_13 {dimension_numbers = #tpu.dot_dimension_numbers<[1], [0], [0], [1], [0, 0, 1, 1], [], []>} : vector<8x32xf32>, vector<32x32xf32>, vector<8x32xf32> -> vector<8x32xf32>
    %33 = arith.addf %31, %32 : vector<8x32xf32>
    %34 = math.tanh %33 : vector<8x32xf32>
    %35 = vector.extract_strided_slice %5 {offsets = [56, 0], sizes = [8, 32], strides = [1, 1]} : vector<128x32xf32> to vector<8x32xf32>
    %cst_14 = arith.constant dense<0.000000e+00> : vector<8x32xf32>
    %36 = tpu.matmul %34, %2, %cst_14 {dimension_numbers = #tpu.dot_dimension_numbers<[1], [0], [0], [1], [0, 0, 1, 1], [], []>} : vector<8x32xf32>, vector<32x32xf32>, vector<8x32xf32> -> vector<8x32xf32>
    %37 = arith.addf %35, %36 : vector<8x32xf32>
    %38 = math.tanh %37 : vector<8x32xf32>
    %39 = vector.extract_strided_slice %5 {offsets = [64, 0], sizes = [8, 32], strides = [1, 1]} : vector<128x32xf32> to vector<8x32xf32>
    %cst_15 = arith.constant dense<0.000000e+00> : vector<8x32xf32>
    %40 = tpu.matmul %38, %2, %cst_15 {dimension_numbers = #tpu.dot_dimension_numbers<[1], [0], [0], [1], [0, 0, 1, 1], [], []>} : vector<8x32xf32>, vector<32x32xf32>, vector<8x32xf32> -> vector<8x32xf32>
    %41 = arith.addf %39, %40 : vector<8x32xf32>
    %42 = math.tanh %41 : vector<8x32xf32>
    %43 = vector.extract_strided_slice %5 {offsets = [72, 0], sizes = [8, 32], strides = [1, 1]} : vector<128x32xf32> to vector<8x32xf32>
    %cst_16 = arith.constant dense<0.000000e+00> : vector<8x32xf32>
    %44 = tpu.matmul %42, %2, %cst_16 {dimension_numbers = #tpu.dot_dimension_numbers<[1], [0], [0], [1], [0, 0, 1, 1], [], []>} : vector<8x32xf32>, vector<32x32xf32>, vector<8x32xf32> -> vector<8x32xf32>
    %45 = arith.addf %43, %44 : vector<8x32xf32>
    %46 = math.tanh %45 : vector<8x32xf32>
    %47 = vector.extract_strided_slice %5 {offsets = [80, 0], sizes = [8, 32], strides = [1, 1]} : vector<128x32xf32> to vector<8x32xf32>
    %cst_17 = arith.constant dense<0.000000e+00> : vector<8x32xf32>
    %48 = tpu.matmul %46, %2, %cst_17 {dimension_numbers = #tpu.dot_dimension_numbers<[1], [0], [0], [1], [0, 0, 1, 1], [], []>} : vector<8x32xf32>, vector<32x32xf32>, vector<8x32xf32> -> vector<8x32xf32>
    %49 = arith.addf %47, %48 : vector<8x32xf32>
    %50 = math.tanh %49 : vector<8x32xf32>
    %51 = vector.extract_strided_slice %5 {offsets = [88, 0], sizes = [8, 32], strides = [1, 1]} : vector<128x32xf32> to vector<8x32xf32>
    %cst_18 = arith.constant dense<0.000000e+00> : vector<8x32xf32>
    %52 = tpu.matmul %50, %2, %cst_18 {dimension_numbers = #tpu.dot_dimension_numbers<[1], [0], [0], [1], [0, 0, 1, 1], [], []>} : vector<8x32xf32>, vector<32x32xf32>, vector<8x32xf32> -> vector<8x32xf32>
    %53 = arith.addf %51, %52 : vector<8x32xf32>
    %54 = math.tanh %53 : vector<8x32xf32>
    %55 = vector.extract_strided_slice %5 {offsets = [96, 0], sizes = [8, 32], strides = [1, 1]} : vector<128x32xf32> to vector<8x32xf32>
    %cst_19 = arith.constant dense<0.000000e+00> : vector<8x32xf32>
    %56 = tpu.matmul %54, %2, %cst_19 {dimension_numbers = #tpu.dot_dimension_numbers<[1], [0], [0], [1], [0, 0, 1, 1], [], []>} : vector<8x32xf32>, vector<32x32xf32>, vector<8x32xf32> -> vector<8x32xf32>
    %57 = arith.addf %55, %56 : vector<8x32xf32>
    %58 = math.tanh %57 : vector<8x32xf32>
    %59 = vector.extract_strided_slice %5 {offsets = [104, 0], sizes = [8, 32], strides = [1, 1]} : vector<128x32xf32> to vector<8x32xf32>
    %cst_20 = arith.constant dense<0.000000e+00> : vector<8x32xf32>
    %60 = tpu.matmul %58, %2, %cst_20 {dimension_numbers = #tpu.dot_dimension_numbers<[1], [0], [0], [1], [0, 0, 1, 1], [], []>} : vector<8x32xf32>, vector<32x32xf32>, vector<8x32xf32> -> vector<8x32xf32>
    %61 = arith.addf %59, %60 : vector<8x32xf32>
    %62 = math.tanh %61 : vector<8x32xf32>
    %63 = vector.extract_strided_slice %5 {offsets = [112, 0], sizes = [8, 32], strides = [1, 1]} : vector<128x32xf32> to vector<8x32xf32>
    %cst_21 = arith.constant dense<0.000000e+00> : vector<8x32xf32>
    %64 = tpu.matmul %62, %2, %cst_21 {dimension_numbers = #tpu.dot_dimension_numbers<[1], [0], [0], [1], [0, 0, 1, 1], [], []>} : vector<8x32xf32>, vector<32x32xf32>, vector<8x32xf32> -> vector<8x32xf32>
    %65 = arith.addf %63, %64 : vector<8x32xf32>
    %66 = math.tanh %65 : vector<8x32xf32>
    %67 = vector.extract_strided_slice %5 {offsets = [120, 0], sizes = [8, 32], strides = [1, 1]} : vector<128x32xf32> to vector<8x32xf32>
    %cst_22 = arith.constant dense<0.000000e+00> : vector<8x32xf32>
    %68 = tpu.matmul %66, %2, %cst_22 {dimension_numbers = #tpu.dot_dimension_numbers<[1], [0], [0], [1], [0, 0, 1, 1], [], []>} : vector<8x32xf32>, vector<32x32xf32>, vector<8x32xf32> -> vector<8x32xf32>
    %69 = arith.addf %67, %68 : vector<8x32xf32>
    %70 = math.tanh %69 : vector<8x32xf32>
    %cst_23 = arith.constant dense<0.000000e+00> : vector<8x128xf32>
    %71 = tpu.matmul %70, %3, %cst_23 {dimension_numbers = #tpu.dot_dimension_numbers<[1], [0], [0], [1], [0, 0, 1, 1], [], []>} : vector<8x32xf32>, vector<32x128xf32>, vector<8x128xf32> -> vector<8x128xf32>
    %72 = arith.addf %71, %4 : vector<8x128xf32>
    %c0_24 = arith.constant 0 : index
    %c0_25 = arith.constant 0 : index
    %73 = vector.load %arg2[%c0_24, %c0_25] : memref<8x128xf32, #tpu.memory_space<vmem>>, vector<8x128xf32>
    tpu.vector_store %arg2[%c0_24, %c0_25], %72 {strides = array<i32>} : memref<8x128xf32, #tpu.memory_space<vmem>>, vector<8x128xf32>,
    return
  }
}

</mosaic_0001>

<bundles_post_ra>
// kernel: rnnplus_forward.1
= control target key start
LH: loop header
LB: loop body
LE: loop exit
PB: predicated region body
PF: predicated region fallthrough
CT: control target
= control target key end

     0   :  { %v2013_v3 = vmov 0.0|0.0   ;;  %vm40_vm0 = vcmask 261120   ;;  %vm2014_vm1 = vmmov 0   ;;  %v2015_v4 = vmov 0.0   ;;  %s2282_s1 = inlined_call_operand.vmem [shape: f32[104,128], index: 1, kind: input, shape index: {}]   ;;  %s2283_s0 = inlined_call_operand.vmem [shape: f32[128,32], index: 0, kind: input, shape index: {}]   ;;  %s2284_s2 = inlined_call_operand.vmem [shape: f32[8,128], index: 2, kind: output, shape index: {}]  }
   0x1   :  { %v27_v0 = vld [vmem:[%s2282_s1] sm:$0xff]  ;;  %v28_v1 = vld [vmem:[%s2282_s1 + $0x8] sm:$0xff]  ;;  %1876 = vmatprep.subr.bf16.mxu1 %v2013_v3  ;;  %1689 = vmatprep.mubr.msk.f32.mxu1 %vm2014_vm1, %v2015_v4  ;;  %v33_v6 = vld [vmem:[%s2282_s1 + $0x30] sm:$0xff] }
   0x2   :  { %v31_v2 = vld [vmem:[%s2282_s1 + $0x20] sm:$0xff]  ;;  %v32_v5 = vld [vmem:[%s2282_s1 + $0x28] sm:$0xff]  ;;  %v34_v7 = vld [vmem:[%s2282_s1 + $0x38] sm:$0xff]  ;;  %v1868_v8 = vpack.c.bf16 %v28_v1, %v27_v0 }
   0x3   :  { %v2052_v9 = vpack.c.bf16 %v32_v5, %v31_v2  ;;  %v29_v10 = vld [vmem:[%s2282_s1 + $0x10] sm:$0xff]  ;;  %v30_v11 = vld [vmem:[%s2282_s1 + $0x18] sm:$0xff]  ;;  %v11_v12 = vld [vmem:[%s2283_s0] sm:$0xff]  ;;  %v2064_v14 = vpack.c.bf16 %v34_v7, %v33_v6 }
   0x4   :  { %1869 = vmatprep.subr.bf16.mxu0 %v1868_v8  ;;  %v1872_v13 = vpack.c.bf16 %v30_v11, %v29_v10  ;;  %1657 = vmatprep.mubr.msk.f32.mxu0 %vm40_vm0, %v11_v12  ;;  %v12_v15 = vld [vmem:[%s2283_s0 + $0x8] sm:$0xff]  ;;  %v13_v22 = vld [vmem:[%s2283_s0 + $0x10] sm:$0xff]  ;;  %v14_v23 = vld [vmem:[%s2283_s0 + $0x18] sm:$0xff] }
   0x5   :  { %1871 = vmatpush3.bf16.msra.mxu0 %v1868_v8  ;;  %1878 = vmatpush3.bf16.msra.mxu1 %v2052_v9  ;;  %v15_v30 = vld [vmem:[%s2283_s0 + $0x20] sm:$0xff]  ;;  %v16_v31 = vld [vmem:[%s2283_s0 + $0x28] sm:$0xff]  ;;  %v17_v32 = vld [vmem:[%s2283_s0 + $0x30] sm:$0xff] }
   0x6   :  { %1873 = vmatprep.subr.bf16.mxu0 %v1872_v13  ;;  %1879 = vmatprep.subr.bf16.mxu1 %v2013_v3  ;;  %v18_v33 = vld [vmem:[%s2283_s0 + $0x38] sm:$0xff]  ;;  %v19_v34 = vld [vmem:[%s2283_s0 + $0x40] sm:$0xff]  ;;  %v20_v35 = vld [vmem:[%s2283_s0 + $0x48] sm:$0xff] }
   0x7   :  { %v21_v36 = vld [vmem:[%s2283_s0 + $0x50] sm:$0xff]  ;;  %v22_v41 = vld [vmem:[%s2283_s0 + $0x58] sm:$0xff]  ;;  %v23_v42 = vld [vmem:[%s2283_s0 + $0x60] sm:$0xff] }
   0x8   :  { %v24_v43 = vld [vmem:[%s2283_s0 + $0x68] sm:$0xff]  ;;  %v25_v44 = vld [vmem:[%s2283_s0 + $0x70] sm:$0xff]  ;;  %v26_v45 = vld [vmem:[%s2283_s0 + $0x78] sm:$0xff] }
   0x9   :  { %1875 = vmatpush3.bf16.msra.mxu0 %v1872_v13  ;;  %1881 = vmatpush3.bf16.msra.mxu1 %v2064_v14 }
   0xa   :  { %1882 = vmatprep.subr.bf16.mxu1 %v2013_v3  ;;  %1900 = vmatprep.subr.bf16.mxu0 %v2013_v3 }
   0xc   :  { %1658 = vmatmul.mubr.msk.f32.vlgmr.msra.gmra.mrb[0].mxu0 %vm40_vm0, %v12_v15  ;;  %1690 = vmatmul.mubr.f32.vlgmr.msra.gmra.mrb[0].mxu1 %v2015_v4 }
   0xd   :  { %1884 = vmatpush3.bf16.msra.mxu1 %v2052_v9  ;;  %1700 = vmatprep.mubr.msk.f32.mxu1 %vm2014_vm1, %v2015_v4 }
   0xe   :  { %1885 = vmatprep.subr.bf16.mxu1 %v2013_v3  ;;  %1902 = vmatpush3.bf16.msra.mxu0 %v2052_v9 }
   0xf   :  { %1903 = vmatprep.subr.bf16.mxu0 %v2013_v3  ;;  %1660 = vmatprep.mubr.msk.f32.mxu0 %vm40_vm0, %v13_v22 }
  0x10   :  { %1661 = vmatmul.mubr.msk.f32.gmra.mrb[2].mxu0 %vm40_vm0, %v14_v23 }
  0x11   :  { %1887 = vmatpush3.bf16.msra.mxu1 %v2064_v14  ;;  %1663 = vmatprep.mubr.msk.f32.mxu0 %vm40_vm0, %v15_v30 }
  0x12   :  { %1888 = vmatprep.subr.bf16.mxu1 %v2013_v3  ;;  %1905 = vmatpush3.bf16.msra.mxu0 %v2064_v14 }
  0x13   :  { %1912 = vmatprep.subr.bf16.mxu0 %v2013_v3 }
  0x14   :  { %1664 = vmatmul.mubr.msk.f32.gmra.mrb[4].mxu0 %vm40_vm0, %v16_v31 }
  0x15   :  { %1666 = vmatprep.mubr.msk.f32.mxu0 %vm40_vm0, %v17_v32 }
  0x18   :  { %1667 = vmatmul.mubr.msk.f32.gmra.mrb[6].mxu0 %vm40_vm0, %v18_v33 }
  0x19   :  { %1669 = vmatprep.mubr.msk.f32.mxu0 %vm40_vm0, %v19_v34 }
  0x1c   :  { %1670 = vmatmul.mubr.msk.f32.gmra.mrb[8].mxu0 %vm40_vm0, %v20_v35 }
  0x1d   :  { %1672 = vmatprep.mubr.msk.f32.mxu0 %vm40_vm0, %v21_v36 }
  0x20   :  { %1673 = vmatmul.mubr.msk.f32.gmra.mrb[10].mxu0 %vm40_vm0, %v22_v41 }
  0x21   :  { %1675 = vmatprep.mubr.msk.f32.mxu0 %vm40_vm0, %v23_v42 }
  0x24   :  { %1676 = vmatmul.mubr.msk.f32.gmra.mrb[12].mxu0 %vm40_vm0, %v24_v43 }
  0x25   :  { %1678 = vmatprep.mubr.msk.f32.mxu0 %vm40_vm0, %v25_v44 }
  0x28   :  { %1679 = vmatmul.mubr.msk.f32.gmra.mrb[14].mxu0 %vm40_vm0, %v26_v45  ;;  %v36_v45 = vld [vmem:[%s2282_s1 + $0x48] sm:$0xff] }
  0x29   :  { %1733 = vmatprep.mubr.msk.f32.mxu0 %vm2014_vm1, %v2015_v4 }
  0xdf   :  { %v1659_v16 = vpop.f32.mrb[0].mxu0  ;;  %v303_v17 = vpop.f32.mrb[0].mxu1 }
  0xe0   :  { %v155_v18 = vpop.f32.mrb[1].mxu0  ;;  %v1691_v19 = vpop.f32.mrb[1].mxu1 }
  0xe1   :  { %v307_v20 = vadd.f32 %v303_v17, %v155_v18 }
  0xe3   :  { %1981 = vtanh.f32 %v307_v20  ;;  %v1662_v28 = vpop.f32.mrb[2].mxu0 }
  0xe4   :  { %v165_v29 = vpop.f32.mrb[3].mxu0 }
  0xe7   :  { %v1665_v46 = vpop.f32.mrb[4].mxu0 }
  0xe8   :  { %v175_v47 = vpop.f32.mrb[5].mxu0 }
  0xeb   :  { %v1668_v48 = vpop.f32.mrb[6].mxu0 }
  0xec   :  { %v185_v49 = vpop.f32.mrb[7].mxu0 }
  0xed   :  { %v1982_v21 = vpop.eup %1981 }
  0xee   :  { %1701 = vmatmul.mubr.msk.f32.vlgmr.msra.gmra.mrb[2].mxu1 %vm40_vm0, %v1982_v21 }
  0xef   :  { %1890 = vmatpush3.bf16.msra.mxu1 %v2052_v9  ;;  %1711 = vmatprep.mubr.msk.f32.mxu1 %vm2014_vm1, %v2015_v4  ;;  %v2165_v50 = vpop.f32.mrb[8].mxu0 }
  0xf0   :  { %1891 = vmatprep.subr.bf16.mxu1 %v2013_v3  ;;  %v2167_v51 = vpop.f32.mrb[9].mxu0 }
  0xf3   :  { %1893 = vmatpush3.bf16.msra.mxu1 %v2064_v14  ;;  %v2176_v56 = vpop.f32.mrb[10].mxu0 }
  0xf4   :  { %1894 = vmatprep.subr.bf16.mxu1 %v2013_v3  ;;  %v2178_v57 = vpop.f32.mrb[11].mxu0 }
  0xf7   :  { %v2180_v58 = vpop.f32.mrb[12].mxu0 }
  0xf8   :  { %v2182_v59 = vpop.f32.mrb[13].mxu0 }
  0xfb   :  { %v2184_v60 = vpop.f32.mrb[14].mxu0 }
  0xfc   :  { %v2186_v61 = vpop.f32.mrb[15].mxu0 }
 0x1c1   :  { %v378_v24 = vpop.f32.mrb[2].mxu1 }
 0x1c2   :  { %v382_v25 = vadd.f32 %v1659_v16, %v378_v24  ;;  %v1702_v26 = vpop.f32.mrb[3].mxu1 }
 0x1c4   :  { %1983 = vtanh.f32 %v382_v25 }
 0x1ce   :  { %v1984_v27 = vpop.eup %1983 }
 0x1cf   :  { %1712 = vmatmul.mubr.msk.f32.vlgmr.msra.gmra.mrb[4].mxu1 %vm40_vm0, %v1984_v27 }
 0x1d0   :  { %1896 = vmatpush3.bf16.msra.mxu1 %v2052_v9  ;;  %1722 = vmatprep.mubr.msk.f32.mxu1 %vm2014_vm1, %v2015_v4 }
 0x1d1   :  { %1897 = vmatprep.subr.bf16.mxu1 %v2013_v3 }
 0x1d4   :  { %1899 = vmatpush3.bf16.msra.mxu1 %v2064_v14 }
 0x1d5   :  { %1906 = vmatprep.subr.bf16.mxu1 %v2013_v3 }
 0x2a2   :  { %v453_v37 = vpop.f32.mrb[4].mxu1 }
 0x2a3   :  { %v457_v38 = vadd.f32 %v453_v37, %v165_v29  ;;  %v1713_v39 = vpop.f32.mrb[5].mxu1 }
 0x2a5   :  { %1985 = vtanh.f32 %v457_v38 }
 0x2af   :  { %v1986_v40 = vpop.eup %1985 }
 0x2b0   :  { %1723 = vmatmul.mubr.msk.f32.vlgmr.msra.gmra.mrb[6].mxu1 %vm40_vm0, %v1986_v40 }
 0x2b1   :  { %1908 = vmatpush3.bf16.msra.mxu1 %v2052_v9  ;;  %1744 = vmatprep.mubr.msk.f32.mxu1 %vm2014_vm1, %v2015_v4 }
 0x2b2   :  { %1909 = vmatprep.subr.bf16.mxu1 %v2013_v3 }
 0x2b5   :  { %1911 = vmatpush3.bf16.msra.mxu1 %v2064_v14 }
 0x2b6   :  { %1918 = vmatprep.subr.bf16.mxu1 %v2013_v3 }
 0x383   :  { %v528_v52 = vpop.f32.mrb[6].mxu1 }
 0x384   :  { %v532_v53 = vadd.f32 %v1662_v28, %v528_v52  ;;  %v1724_v54 = vpop.f32.mrb[7].mxu1 }
 0x386   :  { %1987 = vtanh.f32 %v532_v53  ;;  %v39_v53 = vld [vmem:[%s2282_s1 + $0x60] sm:$0xff] }
 0x390   :  { %v1988_v55 = vpop.eup %1987 }
 0x391   :  { %1734 = vmatmul.mubr.msk.f32.vlgmr.msra.gmra.mrb[16].mxu0 %vm40_vm0, %v1988_v55 }
 0x392   :  { %1914 = vmatpush3.bf16.msra.mxu0 %v2052_v9  ;;  %1755 = vmatprep.mubr.msk.f32.mxu0 %vm2014_vm1, %v2015_v4 }
 0x393   :  { %1915 = vmatprep.subr.bf16.mxu0 %v2013_v3 }
 0x396   :  { %1917 = vmatpush3.bf16.msra.mxu0 %v2064_v14 }
 0x397   :  { %1924 = vmatprep.subr.bf16.mxu0 %v2013_v3 }
 0x464   :  { %v603_v62 = vpop.f32.mrb[16].mxu0 }
 0x465   :  { %v607_v63 = vadd.f32 %v603_v62, %v175_v47  ;;  %v1735_v0 = vpop.f32.mrb[17].mxu0  ;;  %v38_v47 = vld [vmem:[%s2282_s1 + $0x58] sm:$0xff] }
 0x467   :  { %1989 = vtanh.f32 %v607_v63 }
 0x471   :  { %v1990_v1 = vpop.eup %1989 }
 0x472   :  { %1745 = vmatmul.mubr.msk.f32.vlgmr.msra.gmra.mrb[8].mxu1 %vm40_vm0, %v1990_v1 }
 0x473   :  { %1920 = vmatpush3.bf16.msra.mxu1 %v2052_v9  ;;  %1766 = vmatprep.mubr.msk.f32.mxu1 %vm2014_vm1, %v2015_v4 }
 0x474   :  { %1921 = vmatprep.subr.bf16.mxu1 %v2013_v3 }
 0x477   :  { %1923 = vmatpush3.bf16.msra.mxu1 %v2064_v14 }
 0x478   :  { %1930 = vmatprep.subr.bf16.mxu1 %v2013_v3 }
 0x545   :  { %v678_v2 = vpop.f32.mrb[8].mxu1 }
 0x546   :  { %v682_v5 = vadd.f32 %v1665_v46, %v678_v2  ;;  %v1746_v6 = vpop.f32.mrb[9].mxu1 }
 0x548   :  { %1991 = vtanh.f32 %v682_v5 }
 0x552   :  { %v1992_v7 = vpop.eup %1991 }
 0x553   :  { %1756 = vmatmul.mubr.msk.f32.vlgmr.msra.gmra.mrb[18].mxu0 %vm40_vm0, %v1992_v7 }
 0x554   :  { %1926 = vmatpush3.bf16.msra.mxu0 %v2052_v9  ;;  %1777 = vmatprep.mubr.msk.f32.mxu0 %vm2014_vm1, %v2015_v4 }
 0x555   :  { %1927 = vmatprep.subr.bf16.mxu0 %v2013_v3 }
 0x558   :  { %1929 = vmatpush3.bf16.msra.mxu0 %v2064_v14 }
 0x559   :  { %1936 = vmatprep.subr.bf16.mxu0 %v2013_v3 }
 0x626   :  { %v753_v8 = vpop.f32.mrb[18].mxu0 }
 0x627   :  { %v757_v10 = vadd.f32 %v753_v8, %v185_v49  ;;  %v1757_v11 = vpop.f32.mrb[19].mxu0 }
 0x629   :  { %1993 = vtanh.f32 %v757_v10 }
 0x633   :  { %v1994_v12 = vpop.eup %1993 }
 0x634   :  { %1767 = vmatmul.mubr.msk.f32.vlgmr.msra.gmra.mrb[10].mxu1 %vm40_vm0, %v1994_v12 }
 0x635   :  { %1932 = vmatpush3.bf16.msra.mxu1 %v2052_v9  ;;  %1788 = vmatprep.mubr.msk.f32.mxu1 %vm2014_vm1, %v2015_v4 }
 0x636   :  { %1933 = vmatprep.subr.bf16.mxu1 %v2013_v3 }
 0x639   :  { %1935 = vmatpush3.bf16.msra.mxu1 %v2064_v14 }
 0x63a   :  { %1942 = vmatprep.subr.bf16.mxu1 %v2013_v3 }
 0x707   :  { %v828_v13 = vpop.f32.mrb[10].mxu1 }
 0x708   :  { %v832_v15 = vadd.f32 %v1668_v48, %v828_v13  ;;  %v1768_v16 = vpop.f32.mrb[11].mxu1 }
 0x70a   :  { %1995 = vtanh.f32 %v832_v15 }
 0x714   :  { %v1996_v17 = vpop.eup %1995 }
 0x715   :  { %1778 = vmatmul.mubr.msk.f32.vlgmr.msra.gmra.mrb[20].mxu0 %vm40_vm0, %v1996_v17 }
 0x716   :  { %1938 = vmatpush3.bf16.msra.mxu0 %v2052_v9  ;;  %1799 = vmatprep.mubr.msk.f32.mxu0 %vm2014_vm1, %v2015_v4 }
 0x717   :  { %1939 = vmatprep.subr.bf16.mxu0 %v2013_v3 }
 0x71a   :  { %1941 = vmatpush3.bf16.msra.mxu0 %v2064_v14 }
 0x71b   :  { %1948 = vmatprep.subr.bf16.mxu0 %v2013_v3 }
 0x7e8   :  { %v903_v18 = vpop.f32.mrb[20].mxu0 }
 0x7e9   :  { %v907_v19 = vadd.f32 %v903_v18, %v2167_v51  ;;  %v1779_v20 = vpop.f32.mrb[21].mxu0 }
 0x7eb   :  { %1997 = vtanh.f32 %v907_v19 }
 0x7f5   :  { %v1998_v21 = vpop.eup %1997 }
 0x7f6   :  { %1789 = vmatmul.mubr.msk.f32.vlgmr.msra.gmra.mrb[12].mxu1 %vm40_vm0, %v1998_v21 }
 0x7f7   :  { %1944 = vmatpush3.bf16.msra.mxu1 %v2052_v9  ;;  %1810 = vmatprep.mubr.msk.f32.mxu1 %vm2014_vm1, %v2015_v4 }
 0x7f8   :  { %1945 = vmatprep.subr.bf16.mxu1 %v2013_v3 }
 0x7fb   :  { %1947 = vmatpush3.bf16.msra.mxu1 %v2064_v14 }
 0x7fc   :  { %1954 = vmatprep.subr.bf16.mxu1 %v2013_v3 }
 0x8c9   :  { %v978_v22 = vpop.f32.mrb[12].mxu1 }
 0x8ca   :  { %v982_v23 = vadd.f32 %v2165_v50, %v978_v22  ;;  %v1790_v24 = vpop.f32.mrb[13].mxu1 }
 0x8cc   :  { %1999 = vtanh.f32 %v982_v23 }
 0x8d6   :  { %v2000_v25 = vpop.eup %1999 }
 0x8d7   :  { %1800 = vmatmul.mubr.msk.f32.vlgmr.msra.gmra.mrb[22].mxu0 %vm40_vm0, %v2000_v25 }
 0x8d8   :  { %1950 = vmatpush3.bf16.msra.mxu0 %v2052_v9  ;;  %1821 = vmatprep.mubr.msk.f32.mxu0 %vm2014_vm1, %v2015_v4 }
 0x8d9   :  { %1951 = vmatprep.subr.bf16.mxu0 %v2013_v3 }
 0x8dc   :  { %1953 = vmatpush3.bf16.msra.mxu0 %v2064_v14 }
 0x8dd   :  { %1960 = vmatprep.subr.bf16.mxu0 %v2013_v3 }
 0x9aa   :  { %v1053_v26 = vpop.f32.mrb[22].mxu0 }
 0x9ab   :  { %v1057_v27 = vadd.f32 %v1053_v26, %v2178_v57  ;;  %v1801_v28 = vpop.f32.mrb[23].mxu0 }
 0x9ad   :  { %2001 = vtanh.f32 %v1057_v27 }
 0x9b7   :  { %v2002_v29 = vpop.eup %2001 }
 0x9b8   :  { %1811 = vmatmul.mubr.msk.f32.vlgmr.msra.gmra.mrb[14].mxu1 %vm40_vm0, %v2002_v29 }
 0x9b9   :  { %1956 = vmatpush3.bf16.msra.mxu1 %v2052_v9  ;;  %1832 = vmatprep.mubr.msk.f32.mxu1 %vm2014_vm1, %v2015_v4 }
 0x9ba   :  { %1957 = vmatprep.subr.bf16.mxu1 %v2013_v3 }
 0x9bd   :  { %1959 = vmatpush3.bf16.msra.mxu1 %v2064_v14 }
 0x9be   :  { %1966 = vmatprep.subr.bf16.mxu1 %v2013_v3 }
 0xa8b   :  { %v1128_v30 = vpop.f32.mrb[14].mxu1 }
 0xa8c   :  { %v1132_v31 = vadd.f32 %v2176_v56, %v1128_v30  ;;  %v1812_v32 = vpop.f32.mrb[15].mxu1 }
 0xa8e   :  { %2003 = vtanh.f32 %v1132_v31 }
 0xa98   :  { %v2004_v33 = vpop.eup %2003 }
 0xa99   :  { %1822 = vmatmul.mubr.msk.f32.vlgmr.msra.gmra.mrb[24].mxu0 %vm40_vm0, %v2004_v33 }
 0xa9a   :  { %1962 = vmatpush3.bf16.msra.mxu0 %v2052_v9  ;;  %1843 = vmatprep.mubr.msk.f32.mxu0 %vm2014_vm1, %v2015_v4 }
 0xa9b   :  { %1963 = vmatprep.subr.bf16.mxu0 %v2013_v3 }
 0xa9e   :  { %1965 = vmatpush3.bf16.msra.mxu0 %v2064_v14 }
 0xa9f   :  { %1972 = vmatprep.subr.bf16.mxu0 %v2013_v3 }
 0xb6c   :  { %v1203_v34 = vpop.f32.mrb[24].mxu0 }
 0xb6d   :  { %v1207_v35 = vadd.f32 %v1203_v34, %v2182_v59  ;;  %v1823_v36 = vpop.f32.mrb[25].mxu0 }
 0xb6f   :  { %2005 = vtanh.f32 %v1207_v35 }
 0xb79   :  { %v2006_v37 = vpop.eup %2005 }
 0xb7a   :  { %1833 = vmatmul.mubr.msk.f32.vlgmr.msra.gmra.mrb[16].mxu1 %vm40_vm0, %v2006_v37 }
 0xb7b   :  { %1968 = vmatpush3.bf16.msra.mxu1 %v2052_v9  ;;  %1854 = vmatprep.mubr.msk.f32.mxu1 %vm2014_vm1, %v2015_v4 }
 0xb7c   :  { %1969 = vmatprep.subr.bf16.mxu1 %v2013_v3 }
 0xb7f   :  { %1971 = vmatpush3.bf16.msra.mxu1 %v2064_v14  ;;  %v35_v14 = vld [vmem:[%s2282_s1 + $0x40] sm:$0xff] }
 0xb80   :  { %v1973_v46 = vpack.c.bf16 %v36_v45, %v35_v14 }
 0xc4d   :  { %v1278_v38 = vpop.f32.mrb[16].mxu1 }
 0xc4e   :  { %v1282_v39 = vadd.f32 %v2180_v58, %v1278_v38  ;;  %v1834_v40 = vpop.f32.mrb[17].mxu1 }
 0xc50   :  { %2007 = vtanh.f32 %v1282_v39 }
 0xc5a   :  { %v2008_v41 = vpop.eup %2007 }
 0xc5b   :  { %1844 = vmatmul.mubr.msk.f32.vlgmr.msra.gmra.mrb[26].mxu0 %vm40_vm0, %v2008_v41 }
 0xc5c   :  { %1865 = vmatprep.mubr.msk.f32.mxu0 %vm2014_vm1, %v2015_v4  ;;  %v37_v4 = vld [vmem:[%s2282_s1 + $0x50] sm:$0xff]  ;;  %1974 = vmatpush3.bf16.msra.mxu0 %v1973_v46 }
 0xc5d   :  { %v1976_v48 = vpack.c.bf16 %v38_v47, %v37_v4  ;;  %1975 = vmatprep.subr.bf16.mxu0 %v2013_v3 }
 0xc60   :  { %1977 = vmatpush3.bf16.msra.mxu0 %v1976_v48 }
 0xd2e   :  { %v1353_v42 = vpop.f32.mrb[26].mxu0 }
 0xd2f   :  { %v1357_v9 = vadd.f32 %v1353_v42, %v2186_v61  ;;  %v1845_v43 = vpop.f32.mrb[27].mxu0 }
 0xd31   :  { %2009 = vtanh.f32 %v1357_v9 }
 0xd3b   :  { %v2010_v44 = vpop.eup %2009 }
 0xd3c   :  { %1855 = vmatmul.mubr.msk.f32.vlgmr.msra.gmra.mrb[18].mxu1 %vm40_vm0, %v2010_v44 }
 0xe0f   :  { %v1428_v49 = vpop.f32.mrb[18].mxu1 }
 0xe10   :  { %v1432_v50 = vadd.f32 %v2184_v60, %v1428_v49  ;;  %v1856_v51 = vpop.f32.mrb[19].mxu1 }
 0xe12   :  { %2011 = vtanh.f32 %v1432_v50 }
 0xe1c   :  { %v2012_v52 = vpop.eup %2011 }
 0xe1d   :  { %1866 = vmatmul.mubr.msk.f32.vlgmr.msra.gmra.mrb[28].mxu0 %vm40_vm0, %v2012_v52 }
 0xef0   :  { %v1503_v54 = vpop.f32.mrb[28].mxu0 }
 0xef1   :  { %v1504_v55 = vadd.f32 %v1503_v54, %v39_v53  ;;  %v1867_v56 = vpop.f32.mrb[29].mxu0 }
 0xef3   :  { %1507 = vst [vmem:[%s2284_s2] sm:$0xff] %v1504_v55 }

</bundles_post_ra>
